<compile_context>
chip_gen: v6e
topology: v6e:2x2x1
jax: 0.10.0
libtpu: 0.0.40
codegen_flags: <defaults>
</compile_context>

<pallas_src>
import functools

import jax
import jax.numpy as jnp
from jax.experimental import pallas as pl
from jax.experimental.pallas import tpu as pltpu


FP = 128            # padded feature width (lane-dense)
TM_L = 256          # row tile (output nodes), tiled path
TK_L = 512          # reduction tile (neighbor nodes), tiled path
SMALL_NP = 2048     # fast-path threshold (resident A row tile / x stay small)
VMEM_LIMIT = 48 * 1024 * 1024   # headroom under v7x's 64 MiB physical VMEM


# ---------------------------------------------------------------------------
# Kernels
# ---------------------------------------------------------------------------
def _fused_layer_kernel(a_ref, x_ref, xt_ref, wi_ref, wr_ref, b_ref, o_ref):
    """out = relu(A_tile @ (x @ W_init) + x_tile @ W_root + b), fully fused.

    a_ref : [TM, Np] bf16      x_ref : [Np, FP] bf16 (full, resident)
    xt_ref: [TM, FP] bf16      wi/wr : [FP, FP] bf16      b_ref: [1, FP] f32
    (y = x @ W_init is recomputed per row tile; it is a tiny 128-wide matmul
     that hides under the A DMA and avoids a second kernel + HBM round trip.)
    """
    y = jnp.dot(x_ref[...], wi_ref[...],
                preferred_element_type=jnp.float32).astype(jnp.bfloat16)
    root = jnp.dot(xt_ref[...], wr_ref[...],
                   preferred_element_type=jnp.float32) + b_ref[...]
    h = jnp.dot(a_ref[...], y, preferred_element_type=jnp.float32)
    o_ref[...] = jnp.maximum(h + root, 0.0).astype(o_ref.dtype)


def _project_kernel(x_ref, wi_ref, y_ref):
    """y = x @ W_init (bf16), streamed into the propagation kernel."""
    y_ref[...] = jnp.dot(x_ref[...], wi_ref[...],
                         preferred_element_type=jnp.float32).astype(y_ref.dtype)


def _prop_kernel(a_ref, y_ref, xt_ref, wr_ref, b_ref, o_ref, acc_ref, *, tk):
    """out = relu(A @ y + x @ W_root + b) on grid=(row tile i, reduction tile k).

    y_ref is the FULL projected feature matrix (constant index_map -> VMEM
    resident, fetched from HBM exactly once); only the k-th [tk, FP] slice is
    consumed per step.  The root path is fused into the k==0 accumulator init.
    """
    k = pl.program_id(1)

    @pl.when(k == 0)
    def _():
        acc_ref[...] = (jnp.dot(xt_ref[...], wr_ref[...],
                                preferred_element_type=jnp.float32)
                        + b_ref[...])

    start = pl.multiple_of(k * tk, tk)
    y_blk = y_ref[pl.ds(start, tk), :]
    acc_ref[...] += jnp.dot(a_ref[...], y_blk,
                            preferred_element_type=jnp.float32)

    @pl.when(k == pl.num_programs(1) - 1)
    def _():
        o_ref[...] = jnp.maximum(acc_ref[...], 0.0).astype(o_ref.dtype)


# ---------------------------------------------------------------------------
# Per-layer wrappers
# ---------------------------------------------------------------------------
def _arma_layer_fused(a_bf, x_bf, wi, wr, b, out_dtype):
    """Small-graph path: one fused kernel, 2 row tiles (keeps v7x's 2 TCs busy)."""
    np_ = x_bf.shape[0]
    tm = np_ // 2                      # np_ is a multiple of 256 -> tm % 128 == 0
    n_row = np_ // tm

    return pl.pallas_call(
        _fused_layer_kernel,
        out_shape=jax.ShapeDtypeStruct((np_, FP), out_dtype),
        grid=(n_row,),
        in_specs=[
            pl.BlockSpec((tm, np_), lambda i: (i, 0)),    # A row tile
            pl.BlockSpec((np_, FP), lambda i: (0, 0)),    # x (full, resident)
            pl.BlockSpec((tm, FP), lambda i: (i, 0)),     # x row tile (root path)
            pl.BlockSpec((FP, FP), lambda i: (0, 0)),     # W_init
            pl.BlockSpec((FP, FP), lambda i: (0, 0)),     # W_root
            pl.BlockSpec((1, FP), lambda i: (0, 0)),      # bias
        ],
        out_specs=pl.BlockSpec((tm, FP), lambda i: (i, 0)),
        compiler_params=pltpu.CompilerParams(
            dimension_semantics=("parallel",),
            vmem_limit_bytes=VMEM_LIMIT),
    )(a_bf, x_bf, x_bf, wi, wr, b)


def _arma_layer_tiled(a_bf, x_bf, wi, wr, b, out_dtype):
    """Large-graph path: projection kernel + accumulated propagation kernel."""
    np_ = x_bf.shape[0]                # multiple of 512
    n_row = np_ // TM_L
    n_red = np_ // TK_L
    tm_p = min(np_, 512)
    n_row_p = np_ // tm_p

    y = pl.pallas_call(
        _project_kernel,
        out_shape=jax.ShapeDtypeStruct((np_, FP), jnp.bfloat16),
        grid=(n_row_p,),
        in_specs=[pl.BlockSpec((tm_p, FP), lambda i: (i, 0)),
                  pl.BlockSpec((FP, FP), lambda i: (0, 0))],
        out_specs=pl.BlockSpec((tm_p, FP), lambda i: (i, 0)),
        compiler_params=pltpu.CompilerParams(
            dimension_semantics=("parallel",),
            vmem_limit_bytes=VMEM_LIMIT),
    )(x_bf, wi)

    out = pl.pallas_call(
        functools.partial(_prop_kernel, tk=TK_L),
        out_shape=jax.ShapeDtypeStruct((np_, FP), out_dtype),
        grid=(n_row, n_red),                       # reduction axis last
        in_specs=[
            pl.BlockSpec((TM_L, TK_L), lambda i, k: (i, k)),   # A tile
            pl.BlockSpec((np_, FP), lambda i, k: (0, 0)),      # y (resident)
            pl.BlockSpec((TM_L, FP), lambda i, k: (i, 0)),     # x row tile (root)
            pl.BlockSpec((FP, FP), lambda i, k: (0, 0)),       # W_root
            pl.BlockSpec((1, FP), lambda i, k: (0, 0)),        # bias
        ],
        out_specs=pl.BlockSpec((TM_L, FP), lambda i, k: (i, 0)),
        scratch_shapes=[pltpu.VMEM((TM_L, FP), jnp.float32)],
        compiler_params=pltpu.CompilerParams(
            dimension_semantics=("parallel", "arbitrary"),
            vmem_limit_bytes=VMEM_LIMIT),
    )(a_bf, y, x_bf, wr, b)
    return out


# ---------------------------------------------------------------------------
# Full-model glue
# ---------------------------------------------------------------------------
def _normalized_adjacency(edge_index, edge_weight, num_nodes, padded_nodes, dtype):
    """Dense gcn_norm WITHOUT self loops (ARMAConv uses add_self_loops=False).

    Propagation is x_new[i] = sum_{e: col_e=i} norm_e * x[row_e] -> M[col, row].
    Built directly at the padded shape; padded rows/cols stay exactly zero.
    """
    row, col = edge_index[0], edge_index[1]
    deg = jnp.zeros((num_nodes,), jnp.float32).at[col].add(edge_weight)
    dinv = jnp.where(deg > 0, 1.0 / jnp.sqrt(deg), 0.0)
    norm = dinv[row] * edge_weight * dinv[col]
    a = jnp.zeros((padded_nodes, padded_nodes), jnp.float32).at[col, row].add(norm)
    return a.astype(dtype)


def _round_up(v, m):
    return ((v + m - 1) // m) * m


def _pad2d(x, rows, cols):
    r, c = x.shape
    return jnp.pad(x, ((0, rows - r), (0, cols - c)))


def arma_forward(x, edge_index, edge_weight, layer_params, *, dropout_p=0.5,
                 small_path_max_nodes=SMALL_NP):
    """ARMA forward (eval mode). layer_params: list of (w_init, w_root, bias)."""
    n, _ = x.shape
    fout = layer_params[-1][0].shape[1]
    assert all(w.shape[0] <= FP and w.shape[1] <= FP for (w, _, _) in layer_params)

    use_fast = n <= small_path_max_nodes
    if use_fast:
        np_ = _round_up(max(n, 256), 256)
    else:
        np_ = _round_up(n, 512)        # lcm(TM_L, TK_L)

    a_bf = _normalized_adjacency(edge_index, edge_weight, n, np_, jnp.bfloat16)
    h = _pad2d(x.astype(jnp.bfloat16), np_, FP)

    num_layers = len(layer_params)
    out = None
    for li, (w_init, w_root, bias) in enumerate(layer_params):
        is_last = li == num_layers - 1
        out_dtype = jnp.float32 if is_last else jnp.bfloat16
        wi_p = _pad2d(w_init, FP, FP).astype(jnp.bfloat16)
        wr_p = _pad2d(w_root, FP, FP).astype(jnp.bfloat16)
        b_p = jnp.pad(bias, (0, FP - bias.shape[0])).reshape(1, FP).astype(jnp.float32)

        if use_fast:
            out = _arma_layer_fused(a_bf, h, wi_p, wr_p, b_p, out_dtype)
        else:
            out = _arma_layer_tiled(a_bf, h, wi_p, wr_p, b_p, out_dtype)
        # TODO(synk): training-mode dropout (p=dropout_p) would use pltpu.prng_*
        # in-kernel; eval mode (training=False) is identity.
        if not is_last:
            h = out                    # already bf16, emitted directly by the kernel

    # graph_classification=False -> no global_mean_pool; slice off padding.
    return out[:n, :fout]


# ---------------------------------------------------------------------------
# Demo + reference check
# ---------------------------------------------------------------------------
if __name__ == "__main__":
    N = 200          # nodes
    FIN = 16         # in_channels
    HIDDEN = 32      # hidden_units
    FOUT = 8         # out_channels
    NUM_LAYERS = 3   # number_layers

    key = jax.random.PRNGKey(0)
    keys = jax.random.split(key, 6)

    x = jax.random.normal(keys[0], (N, FIN), jnp.float32)

    # Edges: a ring plus random directed edges, positive weights.
    ring_src = jnp.arange(N, dtype=jnp.int32)
    ring_dst = (ring_src + 1) % N
    rand_src = jax.random.randint(keys[1], (N,), 0, N, dtype=jnp.int32)
    rand_dst = jax.random.randint(keys[2], (N,), 0, N, dtype=jnp.int32)
    edge_index = jnp.stack([jnp.concatenate([ring_src, rand_src]),
                            jnp.concatenate([ring_dst, rand_dst])])   # [2, E]
    E = edge_index.shape[1]
    edge_attr = jax.random.uniform(keys[3], (E,), jnp.float32, 0.5, 1.5)

    # Per-layer ARMAConv params (num_stacks=1, num_layers=1): x@W_init, x@W_root + b
    dims = [(FIN, HIDDEN)] + [(HIDDEN, HIDDEN)] * (NUM_LAYERS - 2) + [(HIDDEN, FOUT)]
    layer_params = []
    for li, (fi, fo) in enumerate(dims):
        k1, k2, k3 = jax.random.split(jax.random.fold_in(keys[4], li), 3)
        scale = 1.0 / jnp.sqrt(fi)
        w_init = jax.random.normal(k1, (fi, fo), jnp.float32) * scale
        w_root = jax.random.normal(k2, (fi, fo), jnp.float32) * scale
        bias = jax.random.normal(k3, (fo,), jnp.float32) * 0.01
        layer_params.append((w_init, w_root, bias))

    # Fast (fused, VMEM-resident) path — what the demo size actually exercises.
    out_fast = jax.block_until_ready(arma_forward(x, edge_index, edge_attr, layer_params))
    # Tiled (projection + accumulated propagation) path, forced for coverage.
    out_tiled = jax.block_until_ready(
        arma_forward(x, edge_index, edge_attr, layer_params, small_path_max_nodes=0))

    # Plain-JAX reference with the same bf16 operand casts / f32 accumulation.
    a_ref_bf = _normalized_adjacency(edge_index, edge_attr, N, N, jnp.bfloat16)
    h = x.astype(jnp.bfloat16)
    ref = None
    for (w_init, w_root, bias) in layer_params:
        wi = w_init.astype(jnp.bfloat16)
        wr = w_root.astype(jnp.bfloat16)
        y = jnp.dot(h, wi, preferred_element_type=jnp.float32).astype(jnp.bfloat16)
        root = jnp.dot(h, wr, preferred_element_type=jnp.float32) + bias[None, :]
        ref = jnp.maximum(jnp.dot(a_ref_bf, y, preferred_element_type=jnp.float32) + root, 0.0)
        h = ref.astype(jnp.bfloat16)

    assert out_fast.shape == (N, FOUT) and out_tiled.shape == (N, FOUT)
    err_fast = float(jnp.max(jnp.abs(out_fast - ref)))
    err_tiled = float(jnp.max(jnp.abs(out_tiled - ref)))
    assert err_fast < 2e-2, f"fused path max abs err {err_fast}"
    assert err_tiled < 2e-2, f"tiled path max abs err {err_tiled}"
    print("KERNEL_OK")
</pallas_src>

<mosaic_0001>
module attributes {stable_mosaic.version = 11 : i64} {
  func.func @_fused_layer_kernel(%arg0: i32, %arg1: memref<128x256xbf16, #tpu.memory_space<vmem>>, %arg2: memref<256x128xbf16, #tpu.memory_space<vmem>>, %arg3: memref<128x128xbf16, #tpu.memory_space<vmem>>, %arg4: memref<128x128xbf16, #tpu.memory_space<vmem>>, %arg5: memref<128x128xbf16, #tpu.memory_space<vmem>>, %arg6: memref<1x128xf32, #tpu.memory_space<vmem>>, %arg7: memref<128x128xbf16, #tpu.memory_space<vmem>>) attributes {dimension_semantics = [#tpu.dimension_semantics<parallel>], iteration_bounds = array<i64: 2>, scalar_prefetch = 0 : i64, scratch_operands = 0 : i64, tpu.core_type = #tpu.core_type<tc>, window_params = [{transform_indices = @transform_0, window_bounds = array<i64: 128, 256>}, {pipeline_mode = #tpu.pipeline_mode<synchronous>, transform_indices = @transform_1, window_bounds = array<i64: 256, 128>}, {transform_indices = @transform_2, window_bounds = array<i64: 128, 128>}, {pipeline_mode = #tpu.pipeline_mode<synchronous>, transform_indices = @transform_3, window_bounds = array<i64: 128, 128>}, {pipeline_mode = #tpu.pipeline_mode<synchronous>, transform_indices = @transform_4, window_bounds = array<i64: 128, 128>}, {pipeline_mode = #tpu.pipeline_mode<synchronous>, transform_indices = @transform_5, window_bounds = array<i64: 1, 128>}, {transform_indices = @transform_6, window_bounds = array<i64: 128, 128>}]} {
    %c0 = arith.constant 0 : index
    %c0_0 = arith.constant 0 : index
    %0 = vector.load %arg2[%c0, %c0_0] : memref<256x128xbf16, #tpu.memory_space<vmem>>, vector<256x128xbf16>
    %c0_1 = arith.constant 0 : index
    %c0_2 = arith.constant 0 : index
    %1 = vector.load %arg4[%c0_1, %c0_2] : memref<128x128xbf16, #tpu.memory_space<vmem>>, vector<128x128xbf16>
    %cst = arith.constant dense<0.000000e+00> : vector<256x128xf32>
    %2 = tpu.matmul %0, %1, %cst {dimension_numbers = #tpu.dot_dimension_numbers<[1], [0], [0], [1], [0, 0, 1, 1], [], []>} : vector<256x128xbf16>, vector<128x128xbf16>, vector<256x128xf32> -> vector<256x128xf32>
    %3 = arith.truncf %2 : vector<256x128xf32> to vector<256x128xbf16>
    %c0_3 = arith.constant 0 : index
    %c0_4 = arith.constant 0 : index
    %4 = vector.load %arg3[%c0_3, %c0_4] : memref<128x128xbf16, #tpu.memory_space<vmem>>, vector<128x128xbf16>
    %c0_5 = arith.constant 0 : index
    %c0_6 = arith.constant 0 : index
    %5 = vector.load %arg5[%c0_5, %c0_6] : memref<128x128xbf16, #tpu.memory_space<vmem>>, vector<128x128xbf16>
    %cst_7 = arith.constant dense<0.000000e+00> : vector<128x128xf32>
    %6 = tpu.matmul %4, %5, %cst_7 {dimension_numbers = #tpu.dot_dimension_numbers<[1], [0], [0], [1], [0, 0, 1, 1], [], []>} : vector<128x128xbf16>, vector<128x128xbf16>, vector<128x128xf32> -> vector<128x128xf32>
    %c0_8 = arith.constant 0 : index
    %c0_9 = arith.constant 0 : index
    %7 = vector.load %arg6[%c0_8, %c0_9] : memref<1x128xf32, #tpu.memory_space<vmem>>, vector<1x128xf32>
    %8 = vector.broadcast %7 : vector<1x128xf32> to vector<128x128xf32>
    %9 = arith.addf %6, %8 : vector<128x128xf32>
    %c0_10 = arith.constant 0 : index
    %c0_11 = arith.constant 0 : index
    %10 = vector.load %arg1[%c0_10, %c0_11] : memref<128x256xbf16, #tpu.memory_space<vmem>>, vector<128x256xbf16>
    %cst_12 = arith.constant dense<0.000000e+00> : vector<128x128xf32>
    %11 = tpu.matmul %10, %3, %cst_12 {dimension_numbers = #tpu.dot_dimension_numbers<[1], [0], [0], [1], [0, 0, 1, 1], [], []>} : vector<128x256xbf16>, vector<256x128xbf16>, vector<128x128xf32> -> vector<128x128xf32>
    %12 = arith.addf %11, %9 : vector<128x128xf32>
    %cst_13 = arith.constant 0.000000e+00 : f32
    %13 = vector.broadcast %cst_13 : f32 to vector<128x128xf32>
    %14 = arith.maximumf %12, %13 : vector<128x128xf32>
    %15 = arith.truncf %14 : vector<128x128xf32> to vector<128x128xbf16>
    %c0_14 = arith.constant 0 : index
    %c0_15 = arith.constant 0 : index
    %16 = vector.load %arg7[%c0_14, %c0_15] : memref<128x128xbf16, #tpu.memory_space<vmem>>, vector<128x128xbf16>
    tpu.vector_store %arg7[%c0_14, %c0_15], %15 {strides = array<i32>} : memref<128x128xbf16, #tpu.memory_space<vmem>>, vector<128x128xbf16>,
    return
  }
  func.func @transform_0(%arg0: i32) -> (i32, i32) {
    %c0_i32 = arith.constant 0 : i32
    %c0_i32_0 = arith.constant 0 : i32
    return %arg0, %c0_i32 : i32, i32
  }
  func.func @transform_1(%arg0: i32) -> (i32, i32) {
    %c0_i32 = arith.constant 0 : i32
    %c0_i32_0 = arith.constant 0 : i32
    %c0_i32_1 = arith.constant 0 : i32
    return %c0_i32, %c0_i32_0 : i32, i32
  }
  func.func @transform_2(%arg0: i32) -> (i32, i32) {
    %c0_i32 = arith.constant 0 : i32
    %c0_i32_0 = arith.constant 0 : i32
    return %arg0, %c0_i32 : i32, i32
  }
  func.func @transform_3(%arg0: i32) -> (i32, i32) {
    %c0_i32 = arith.constant 0 : i32
    %c0_i32_0 = arith.constant 0 : i32
    %c0_i32_1 = arith.constant 0 : i32
    return %c0_i32, %c0_i32_0 : i32, i32
  }
  func.func @transform_4(%arg0: i32) -> (i32, i32) {
    %c0_i32 = arith.constant 0 : i32
    %c0_i32_0 = arith.constant 0 : i32
    %c0_i32_1 = arith.constant 0 : i32
    return %c0_i32, %c0_i32_0 : i32, i32
  }
  func.func @transform_5(%arg0: i32) -> (i32, i32) {
    %c0_i32 = arith.constant 0 : i32
    %c0_i32_0 = arith.constant 0 : i32
    %c0_i32_1 = arith.constant 0 : i32
    return %c0_i32, %c0_i32_0 : i32, i32
  }
  func.func @transform_6(%arg0: i32) -> (i32, i32) {
    %c0_i32 = arith.constant 0 : i32
    %c0_i32_0 = arith.constant 0 : i32
    return %arg0, %c0_i32 : i32, i32
  }
}

</mosaic_0001>

<bundles_post_ra>
// kernel: tpu_custom_call.1
= control target key start
LH: loop header
LB: loop body
LE: loop exit
PB: predicated region body
PF: predicated region fallthrough
CT: control target
= control target key end

     0   :  { %s2517_s0 = inlined_call_operand.hbm [shape: bf16[256,256], index: 0, kind: input, shape index: {}]   ;;  %s2518_s1 = inlined_call_operand.hbm [shape: bf16[256,128], index: 1, kind: input, shape index: {}]   ;;  %s2519_s2 = inlined_call_operand.hbm [shape: bf16[256,128], index: 2, kind: input, shape index: {}]   ;;  %s2520_s3 = inlined_call_operand.hbm [shape: bf16[128,128], index: 3, kind: input, shape index: {}]   ;;  %s2521_s4 = inlined_call_operand.hbm [shape: bf16[128,128], index: 4, kind: input, shape index: {}]   ;;  %s2522_s5 = inlined_call_operand.vmem [shape: f32[1,128], index: 5, kind: input, shape index: {}]   ;;  %s2523_s6 = inlined_call_operand.hbm [shape: bf16[256,128], index: 6, kind: output, shape index: {}]  }
   0x1   :  { %2535 = sst [smem:[#allocation19_spill]] %s2517_s0 }
   0x2   :  { %2536 = sst [smem:[#allocation20_spill]] %s2518_s1 }
   0x3   :  { %11 = vsyncpa [#allocation3], 0 }
   0x4   :  { %13 = vsyncpa [#allocation3 + $0x1], 0 }
   0x5   :  { %14 = vsyncpa [#allocation6], 0 }
   0x6   :  { %15 = vsyncpa [#allocation10], 0 }
   0x7   :  { %16 = vsyncpa [#allocation4], 0 }
   0x8   :  { %18 = vsyncpa [#allocation4 + $0x1], 0  ;;  %s2162_s21 = smov 0   ;;  %s2164_s22 = smov 0  }
   0x9   :  { %s2166_s23 = smov 0   ;;  %s2168_s24 = smov 0  }
   0xa LB: > { %s2183_s25 = sadd.s32 4294967295, %s2113_s24   ;;  %s1382_s26 = sadd.s32 4294967294, %s2113_s24   ;;  %s2113_s24 = sphi %s2168_s24, %s2561_s24   ;;  %s2109_s23 = sphi %s2166_s23, %s2564_s23   ;;  %s2105_s22 = sphi %s2164_s22, %s2563_s22   ;;  %s2101_s21 = sphi %s2162_s21, %s2562_s21  }
   0xb   : > { %p44_p0 = scmp.ne.s32.totalorder %s2105_s22, %s2101_s21  ;;  %p2530_p1 = scmp.eq.s32.totalorder %s2183_s25, 0 }
   0xc   : > { %p178_p2 = scmp.eq.s32.totalorder %s2183_s25, 1  ;;  %p184_p3 = scmp.eq.s32.totalorder %s1382_s26, 1 }
   0xd   : > { %p2192_p4 = por %p2530_p1, %p44_p0  ;;  %p1383_p5 = scmp.ge.s32.totalorder %s2113_s24, 1 }
   0xe   : > { %p2197_p6 = por %p184_p3, %p44_p0  ;;  %p191_p7 = scmp.lt.s32.totalorder %s2113_s24, 3 }
   0xf   : > { %s2537_s27 = scalar_select %p2192_p4, 1, 0 }
  0x10   : > { %s2538_s28 = scalar_select %p2197_p6, 1, 0 }
  0x11   : > { %p2202_p8 = pnand %p1383_p5, %p191_p7  ;;  %s2115_s30 = smov [#allocation5]  }
  0x12   : > { %s203_s7 = sshll.u32 %s2115_s30, 4  ;;  %s2216_s9 = sadd.s32 1, %s2113_s24   ;;  %s204_s7 = int_to_ptr.vmem [resolvable:$true] %s203_s7 }
  0x13   : > { %s2539_s29 = scalar_select %p2202_p8, 1, 0 }
  0x14   : > { %p1765_p9 = pneg %p2202_p8  ;;  %2541 = sst [smem:[#allocation18_spill]] %s2216_s9 }
  0x15   : > { %s31_s10 = sadd.s32 1, %s2109_s23  ;;  %s28_s11 = ssub.s32 %s2113_s24, %s2216_s9 }
  0x16   : > { %p2211_p11 = pnand %p1765_p9, %p2530_p1  ;;  %s1910_s12 = scalar_lea.vmem %s204_s7, 2048 }
  0x17   : > { %p1911_p13 = scmp.ne.s32.totalorder %s204_s7, %s1910_s12  ;;  %p1918_p5 = scmp.lt.s32.totalorder %s204_s7, %s204_s7 }
  0x18   : > { %p2531_p12 = pneg %p2211_p11  ;;  %p1919_p7 = scmp.lt.s32.totalorder %s1910_s12, %s1910_s12 }
  0x1a   : > { %p1913_p0 = pnand %p1911_p13, %p2531_p12  ;;  %p1920_p9 = por %p1919_p7, %p1918_p5 }
  0x1c   : > { %p1914_p3 = pneg %p1913_p0 }
  0x1e   : > { %p1921_p10 = pnand %p1920_p9, %p1914_p3 }
  0x20   : > { %1924 = shalt.err (!%p1921_p10)
}
  0x21   : > { %s2526_s13 = smov 64   ;;  %s2528_s14 = smov 4  }
  0x22   : > { %s2542_s1 = sld [smem:[#allocation20_spill]]  ;;  %p29_p10 = scmp.eq.s32.totalorder %s28_s11, 0 }
  0x23   : > { %p38_p13 = scmp.ne.s32.totalorder %s2109_s23, %s2105_s22  ;;  %p39_p0 = scmp.eq.s32.totalorder %s2113_s24, 0 }
  0x24   : > { %p1789_p3 = scmp.lt.s32.totalorder %s2113_s24, 2  ;;  %s246_s19 = sand.u32 1, %s2113_s24  }
  0x25   : > { %s2239_s17 = scalar_select %p29_p10, %s2109_s23, %s31_s10  }
  0x26   : > { %p40_p5 = por %p39_p0, %p38_p13  ;;  %p2243_p7 = por %p178_p2, %p38_p13 }
  0x27   : > { %s248_s20 = sand.u32 1, %s2109_s23   ;;  %s1481_s30 = sshll.u32 %s2113_s24, 11 }
  0x28   : > { %1768 = dma.hbm_to_vmem [thread:$0]  (!%p2211_p11), %s2542_s1, 2048, %s204_s7, [#allocation6], %s2526_s13, %s2526_s13, %s2528_s14  }
  0x29   : > { %s2543_s18 = scalar_select %p2243_p7, 1, 0 }
  0x2a   : > { %s1388_s26 = sshll.u32 %s248_s20, 7  ;;  %s2544_s0 = sld [smem:[#allocation19_spill]] }
  0x2b   : > { %s250_s10 = scalar_lea.vmem [#allocation2], %s1388_s26  ;;  %p2257_p2 = pnand %p1789_p3, %p40_p5 }
  0x2c   : > { %s258_s11 = sshll.u32 %s250_s10, 4  ;;  %s2261_s16 = sshll.u32 %s248_s20, 6  ;;  %s2255_s11 = int_to_ptr.vmem [resolvable:$true] %s258_s11 }
  0x2d   : > { %s2263_s13 = scalar_lea.sflag [#allocation3], %s246_s19  ;;  %p1927_p10 = pneg %p2257_p2 }
  0x30   : > { %s2253_s7 = scalar_lea.hbm %s2544_s0, %s1481_s30  ;;  %s1930_s12 = scalar_lea.hbm %s2544_s0, 4096 }
  0x31   : > { %s1925_s9 = scalar_lea.hbm %s2253_s7, 2048  ;;  %p1931_p3 = scmp.lt.s32.totalorder %s2253_s7, %s2544_s0 }
  0x32   : > { %p1926_p9 = scmp.ne.s32.totalorder %s2253_s7, %s1925_s9  ;;  %p1932_p5 = scmp.lt.s32.totalorder %s1930_s12, %s1925_s9 }
  0x34   : > { %p1928_p13 = pnand %p1927_p10, %p1926_p9  ;;  %p1933_p1 = por %p1932_p5, %p1931_p3 }
  0x36   : > { %p1929_p0 = pneg %p1928_p13 }
  0x38   : > { %p1934_p12 = pnand %p1933_p1, %p1929_p0 }
  0x3a   : > { %1937 = shalt.err (!%p1934_p12)
}
  0x3b   : > { %s1938_s19 = scalar_lea.vmem %s2255_s11, 2048  ;;  %s2118_s20 = smov [#allocation2]  }
  0x3c   : > { %p1939_p6 = scmp.ne.s32.totalorder %s2255_s11, %s1938_s19  ;;  %s1943_s26 = sshll.u32 %s2118_s20, 4  ;;  %s1944_s26 = int_to_ptr.vmem [resolvable:$false] %s1943_s26 }
  0x3d   : > { %s1945_s30 = scalar_lea.vmem %s1944_s26, 4096  ;;  %p1946_p7 = scmp.lt.s32.totalorder %s2255_s11, %s1944_s26 }
  0x3e   : > { %p1941_p9 = pnand %p1939_p6, %p1927_p10  ;;  %p1947_p4 = scmp.lt.s32.totalorder %s1945_s30, %s1938_s19 }
  0x40   : > { %p1942_p13 = pneg %p1941_p9  ;;  %p1948_p8 = por %p1947_p4, %p1946_p7 }
  0x42   : > { %p1949_p3 = pnand %p1948_p8, %p1942_p13 }
  0x44   : > { %1952 = shalt.err (!%p1949_p3)
}
  0x45   : > { %s2119_s14 = smov 128   ;;  %s2120_s9 = smov 8  }
  0x46   : > { %1778 = dma.hbm_to_vmem [thread:$0]  (!%p2257_p2), %s2253_s7, 2048, %s2255_s11, %s2263_s13, %s2119_s14, %s2119_s14, %s2120_s9  }
  0x47   : > { %s272_s12 = scalar_lea.vmem [#allocation7], %s2261_s16  ;;  %s2121_s20 = smov [#allocation8]  }
  0x48   : > { %s2291_s10 = sshll.u32 %s272_s12, 4  ;;  %s216_s0 = sshll.u32 %s2121_s20, 4  ;;  %s217_s0 = int_to_ptr.vmem [resolvable:$true] %s216_s0  ;;  %s280_s10 = int_to_ptr.vmem [resolvable:$true] %s2291_s10 }
  0x49   : > { %s1964_s19 = scalar_lea.vmem %s217_s0, 1024  ;;  %p2546_p4 = pneg %p2211_p11 }
  0x4a   : > { %p1965_p1 = scmp.ne.s32.totalorder %s217_s0, %s1964_s19  ;;  %p1972_p12 = scmp.lt.s32.totalorder %s217_s0, %s217_s0 }
  0x4b   : > { %p1973_p7 = scmp.lt.s32.totalorder %s1964_s19, %s1964_s19 }
  0x4c   : > { %p1967_p6 = pnand %p1965_p1, %p2546_p4 }
  0x4d   : > { %p1974_p0 = por %p1973_p7, %p1972_p12 }
  0x4e   : > { %p1968_p8 = pneg %p1967_p6 }
  0x50   : > { %p1975_p5 = pnand %p1974_p0, %p1968_p8 }
  0x52   : > { %1978 = shalt.err (!%p1975_p5)
}
  0x53   : > { %s2547_s7 = smov 4   ;;  %s2548_s11 = smov 64  }
  0x54   : > { %1771 = dma.hbm_to_vmem [thread:$0]  (!%p2211_p11), %s2520_s3, 1024, %s217_s0, [#allocation6], %s2548_s11, %s2548_s11, %s2547_s7  }
  0x55   : > { %s2122_s30 = smov [#allocation9]   ;;  %s1482_s9 = sshll.u32 %s2113_s24, 10 }
  0x56   : > { %s229_s14 = sshll.u32 %s2122_s30, 4  ;;  %s2308_s19 = scalar_lea.hbm %s2519_s2, %s1482_s9  ;;  %s230_s14 = int_to_ptr.vmem [resolvable:$true] %s229_s14 }
  0x57   : > { %s1990_s1 = scalar_lea.vmem %s230_s14, 1024  ;;  %p2549_p13 = pmov %p2546_p4 }
  0x58   : > { %p1991_p9 = scmp.ne.s32.totalorder %s230_s14, %s1990_s1  ;;  %p1998_p4 = scmp.lt.s32.totalorder %s230_s14, %s230_s14 }
  0x59   : > { %p1999_p6 = scmp.lt.s32.totalorder %s1990_s1, %s1990_s1 }
  0x5a   : > { %p1993_p3 = pnand %p1991_p9, %p2549_p13 }
  0x5b   : > { %p2000_p8 = por %p1999_p6, %p1998_p4 }
  0x5c   : > { %p1994_p1 = pneg %p1993_p3 }
  0x5e   : > { %p2001_p12 = pnand %p2000_p8, %p1994_p1 }
  0x60   : > { %2004 = shalt.err (!%p2001_p12)
}
  0x61   : > { %1774 = dma.hbm_to_vmem [thread:$0]  (!%p2211_p11), %s2521_s4, 1024, %s230_s14, [#allocation10], %s2548_s11, %s2548_s11, %s2547_s7  }
  0x62   : > { %s2005_s26 = scalar_lea.hbm %s2308_s19, 1024  ;;  %s2010_s30 = scalar_lea.hbm %s2519_s2, 2048 }
  0x63   : > { %p2006_p7 = scmp.ne.s32.totalorder %s2308_s19, %s2005_s26  ;;  %p2011_p9 = scmp.lt.s32.totalorder %s2308_s19, %s2519_s2 }
  0x64   : > { %p2012_p13 = scmp.lt.s32.totalorder %s2010_s30, %s2005_s26 }
  0x65   : > { %p2008_p0 = pnand %p2006_p7, %p1927_p10 }
  0x66   : > { %p2013_p3 = por %p2012_p13, %p2011_p9 }
  0x67   : > { %p2009_p5 = pneg %p2008_p0 }
  0x69   : > { %p2014_p1 = pnand %p2013_p3, %p2009_p5 }
  0x6b   : > { %2017 = shalt.err (!%p2014_p1)
}
  0x6c   : > { %s2018_s14 = scalar_lea.vmem %s280_s10, 1024  ;;  %s2123_s20 = smov [#allocation7]  }
  0x6d   : > { %p2019_p11 = scmp.ne.s32.totalorder %s280_s10, %s2018_s14  ;;  %s2023_s0 = sshll.u32 %s2123_s20, 4  ;;  %s2024_s0 = int_to_ptr.vmem [resolvable:$false] %s2023_s0 }
  0x6e   : > { %s2025_s16 = scalar_lea.vmem %s2024_s0, 2048  ;;  %p2026_p8 = scmp.lt.s32.totalorder %s280_s10, %s2024_s0 }
  0x6f   : > { %p2021_p4 = pnand %p2019_p11, %p1927_p10  ;;  %p2027_p12 = scmp.lt.s32.totalorder %s2025_s16, %s2018_s14 }
  0x71   : > { %p2022_p6 = pneg %p2021_p4  ;;  %p2028_p7 = por %p2027_p12, %p2026_p8 }
  0x73   : > { %p2029_p0 = pnand %p2028_p7, %p2022_p6 }
  0x75   : > { %2032 = shalt.err (!%p2029_p0)
}
  0x76   : > { %1781 = dma.hbm_to_vmem [thread:$0]  (!%p2257_p2), %s2308_s19, 1024, %s280_s10, %s2263_s13, %s2548_s11, %s2548_s11, %s2547_s7  }
  0x77   : > { %p2550_p10 = scmp.ne.s32.totalorder %s2539_s29, 0 }
  0x78   : > { %s293_s26 = sand.u32 (!%p2550_p10), 1, %s2183_s25   ;;  %s2348_s1 = sand.u32 (!%p2550_p10), 1, %s2105_s22  }
  0x79   : > { %291 = sbr.rel (%p2550_p10) target bundleno = 720 (0x2d0), region = 44  ;;  %s1396_s8 = sshll.u32 (!%p2550_p10), %s2348_s1, 7 }
  0x7a   : > { %s294_s30 = scalar_lea.sflag (!%p2550_p10), [#allocation3], %s293_s26  ;;  %s2351_s9 = scalar_lea.vmem (!%p2550_p10), [#allocation2], %s1396_s8 }
  0x7b   : > { %p2551_p5 = scmp.ne.s32.totalorder (!%p2550_p10), %s2537_s27, 0 }
  0x7e   : > { %2076 = dma.done.wait (%p2551_p5), %s294_s30, 2048  }
  0x7f   : > { %2078 = vsyncadd (%p2551_p5), %s294_s30, 4294965248  ;;  %p2552_p2 = scmp.eq.s32.totalorder %s2183_s25, 0 }
  0x81   : > { %2080 = dma.done.wait (%p2552_p2), [#allocation6], 2048   ;;  %p2553_p9 = pmov %p2552_p2 }
  0x82   : > { %s1398_s29 = sshll.u32 %s2348_s1, 6 }
  0x83   : > { %2082 = vsyncadd (%p2553_p9), [#allocation6], 4294965248  ;;  %s2364_s13 = scalar_lea.vmem [#allocation7], %s1398_s29 }
  0x84   : > { %2084 = dma.done.wait (%p2551_p5), %s294_s30, 1024  }
  0x85   : > { %2086 = vsyncadd (%p2551_p5), %s294_s30, 4294966272  ;;  %p2554_p13 = pmov %p2552_p2 }
  0x86   : > { %p2555_p3 = pmov %p2552_p2 }
  0x87   : > { %2088 = dma.done.wait (%p2554_p13), [#allocation6], 1024  }
  0x88   : > { %2090 = vsyncadd (%p2555_p3), [#allocation6], 4294966272  ;;  %p2556_p1 = pmov %p2552_p2 }
  0x8a   : > { %2092 = dma.done.wait (%p2556_p1), [#allocation10], 1024   ;;  %p2557_p11 = pmov %p2556_p1 }
  0x8b   : > { %v1835_v0 = vld [vmem:[#allocation8 + $0x38] sm:$0xff]   ;;  %v1836_v1 = vld [vmem:[#allocation8 + $0x30] sm:$0xff]   ;;  %v1837_v2 = vld [vmem:[#allocation8 + $0x28] sm:$0xff]   ;;  %s2441_s10 = scalar_lea.vmem [#allocation11], %s1398_s29  ;;  %s1499_s7 = sshll.u32 %s2183_s25, 10 }
  0x8c   : > { %2094 = vsyncadd (%p2557_p11), [#allocation10], 4294966272  ;;  %1651 = vmatprep.subr.bf16.mxu0 %v1835_v0  ;;  %v1838_v3 = vld [vmem:[#allocation8 + $0x20] sm:$0xff]   ;;  %v1839_v5 = vld [vmem:[#allocation8 + $0x18] sm:$0xff]   ;;  %s1260_s11 = sshll.u32 %s2441_s10, 4  ;;  %s2471_s14 = scalar_lea.hbm %s2523_s6, %s1499_s7  ;;  %s2473_s11 = int_to_ptr.vmem [resolvable:$true] %s1260_s11 }
  0x8d   : > { %1652 = vmatpush3.bf16.msra.mxu0 %v1835_v0  ;;  %v1843_v4 = vld [vmem:[#allocation5] sm:$0xff]   ;;  %v1840_v6 = vld [vmem:[#allocation8 + $0x10] sm:$0xff]   ;;  %v1841_v7 = vld [vmem:[#allocation8 + $0x8] sm:$0xff]   ;;  %s1247_s20 = scalar_lea.sflag [#allocation4], %s2348_s1  ;;  %s2033_s0 = scalar_lea.vmem %s2473_s11, 1024 }
  0x8e   : > { %1653 = vmatprep.subr.bf16.mxu0 %v1836_v1  ;;  %1667 = vmatprep.mubr.bf16.mxu0 %v1843_v4  ;;  %v1842_v8 = vld [vmem:[#allocation8] sm:$0xff]   ;;  %v1844_v9 = vld [vmem:[#allocation5 + $0x8] sm:$0xff]   ;;  %v1845_v10 = vld [vmem:[#allocation5 + $0x10] sm:$0xff]   ;;  %p2034_p4 = scmp.ne.s32.totalorder %s2473_s11, %s2033_s0  ;;  %p2558_p6 = scmp.ne.s32.totalorder %s2543_s18, 0 }
  0x8f   : > { %v1846_v11 = vld [vmem:[#allocation5 + $0x18] sm:$0xff]   ;;  %v1847_v12 = vld [vmem:[#allocation5 + $0x20] sm:$0xff]   ;;  %v1848_v13 = vld [vmem:[#allocation5 + $0x28] sm:$0xff]   ;;  %s2124_s25 = smov [#allocation11]  }
  0x90   : > { %v1849_v14 = vld [vmem:[#allocation5 + $0x30] sm:$0xff]   ;;  %v1850_v15 = vld [vmem:[#allocation5 + $0x38] sm:$0xff]   ;;  %v1851_v16 = vld [vmem:[#allocation5 + $0x40] sm:$0xff]   ;;  %p2035_p8 = pnand %p2034_p4, %p2558_p6  ;;  %s2037_s16 = sshll.u32 %s2124_s25, 4  ;;  %s2038_s16 = int_to_ptr.vmem [resolvable:$false] %s2037_s16 }
  0x91   : > { %1654 = vmatpush3.bf16.msra.mxu0 %v1836_v1  ;;  %v1852_v17 = vld [vmem:[#allocation5 + $0x48] sm:$0xff]   ;;  %v1853_v18 = vld [vmem:[#allocation5 + $0x50] sm:$0xff]   ;;  %v1854_v19 = vld [vmem:[#allocation5 + $0x58] sm:$0xff]   ;;  %s2039_s26 = scalar_lea.vmem %s2038_s16, 2048  ;;  %p2040_p7 = scmp.lt.s32.totalorder %s2473_s11, %s2038_s16 }
  0x92   : > { %1655 = vmatprep.subr.bf16.mxu0 %v1837_v2  ;;  %v1855_v20 = vld [vmem:[#allocation5 + $0x60] sm:$0xff]   ;;  %v1856_v21 = vld [vmem:[#allocation5 + $0x68] sm:$0xff]   ;;  %v1857_v22 = vld [vmem:[#allocation5 + $0x70] sm:$0xff]   ;;  %p2036_p12 = pneg %p2035_p8  ;;  %p2041_p0 = scmp.lt.s32.totalorder %s2039_s26, %s2033_s0 }
  0x93   : > { %v1858_v23 = vld [vmem:[#allocation5 + $0x78] sm:$0xff]   ;;  %v1860_v25 = vld [vmem:[#allocation9 + $0x30] sm:$0xff]   ;;  %v1861_v26 = vld [vmem:[#allocation9 + $0x28] sm:$0xff]  }
  0x94   : > { %v1859_v24 = vld [vmem:[#allocation9 + $0x38] sm:$0xff]   ;;  %v1862_v27 = vld [vmem:[#allocation9 + $0x20] sm:$0xff]   ;;  %v1864_v29 = vld [vmem:[#allocation9 + $0x10] sm:$0xff]   ;;  %p2042_p10 = por %p2041_p0, %p2040_p7 }
  0x95   : > { %1656 = vmatpush3.bf16.msra.mxu0 %v1837_v2  ;;  %1699 = vmatprep.subr.bf16.mxu1 %v1859_v24  ;;  %v1863_v28 = vld [vmem:[#allocation9 + $0x18] sm:$0xff]   ;;  %v1865_v30 = vld [vmem:[#allocation9 + $0x8] sm:$0xff]   ;;  %v1866_v31 = vld [vmem:[#allocation9] sm:$0xff]  }
  0x96   : > { %1657 = vmatprep.subr.bf16.mxu0 %v1838_v3  ;;  %1700 = vmatpush3.bf16.msra.mxu1 %v1859_v24  ;;  %v1867_v32 = vld [vmem:[%s2364_s13] sm:$0xff]   ;;  %v1868_v33 = vld [vmem:[%s2364_s13 + $0x8] sm:$0xff]   ;;  %v1869_v34 = vld [vmem:[%s2364_s13 + $0x10] sm:$0xff]   ;;  %p2043_p5 = pnand %p2042_p10, %p2036_p12 }
  0x97   : > { %1701 = vmatprep.subr.bf16.mxu1 %v1860_v25  ;;  %1715 = vmatprep.mubr.bf16.mxu1 %v1867_v32  ;;  %v1870_v35 = vld [vmem:[%s2364_s13 + $0x18] sm:$0xff]   ;;  %v1871_v36 = vld [vmem:[%s2364_s13 + $0x20] sm:$0xff]   ;;  %v1872_v37 = vld [vmem:[%s2364_s13 + $0x28] sm:$0xff]  }
  0x98   : > { %v1873_v38 = vld [vmem:[%s2364_s13 + $0x30] sm:$0xff]   ;;  %v1874_v39 = vld [vmem:[%s2364_s13 + $0x38] sm:$0xff]   ;;  %v1877_v40 = vld [vmem:[%s2351_s9 + $0x4] ss:$8 sps:$4 sm:$0xff]  }
  0x99   : > { %1658 = vmatpush3.bf16.msra.mxu0 %v1838_v3  ;;  %v1880_v41 = vld [vmem:[%s2351_s9 + $0x24] ss:$8 sps:$4 sm:$0xff]  }
  0x9a   : > { %1659 = vmatprep.subr.bf16.mxu0 %v1839_v5  ;;  %1702 = vmatpush3.bf16.msra.mxu1 %v1860_v25  ;;  %v1887_v32 = vld [vmem:[%s2351_s9 + $0x44] ss:$8 sps:$4 sm:$0xff]  }
  0x9b   : > { %1703 = vmatprep.subr.bf16.mxu1 %v1861_v26 }
  0x9d   : > { %1660 = vmatpush3.bf16.msra.mxu0 %v1839_v5 }
  0x9e   : > { %1661 = vmatprep.subr.bf16.mxu0 %v1840_v6  ;;  %1704 = vmatpush3.bf16.msra.mxu1 %v1861_v26  ;;  %v1875_v26 = vld [vmem:[%s2351_s9] ss:$8 sps:$4 sm:$0xff]  }
  0x9f   : > { %1705 = vmatprep.subr.bf16.mxu1 %v1862_v27 }
  0xa1   : > { %1662 = vmatpush3.bf16.msra.mxu0 %v1840_v6 }
  0xa2   : > { %1663 = vmatprep.subr.bf16.mxu0 %v1841_v7  ;;  %1706 = vmatpush3.bf16.msra.mxu1 %v1862_v27  ;;  %v1878_v27 = vld [vmem:[%s2351_s9 + $0x20] ss:$8 sps:$4 sm:$0xff]  }
  0xa3   : > { %1707 = vmatprep.subr.bf16.mxu1 %v1863_v28 }
  0xa5   : > { %1664 = vmatpush3.bf16.msra.mxu0 %v1841_v7 }
  0xa6   : > { %1665 = vmatprep.subr.bf16.mxu0 %v1842_v8  ;;  %1708 = vmatpush3.bf16.msra.mxu1 %v1863_v28  ;;  %v1881_v28 = vld [vmem:[%s2351_s9 + $0x14] ss:$8 sps:$4 sm:$0xff]  }
  0xa7   : > { %1709 = vmatprep.subr.bf16.mxu1 %v1864_v29 }
  0xa9   : > { %1666 = vmatpush3.bf16.msra.mxu0 %v1842_v8 }
  0xaa   : > { %1710 = vmatpush3.bf16.msra.mxu1 %v1864_v29  ;;  %v1883_v29 = vld [vmem:[%s2351_s9 + $0x34] ss:$8 sps:$4 sm:$0xff]  }
  0xab   : > { %1711 = vmatprep.subr.bf16.mxu1 %v1865_v30 }
  0xac   : > { %1668 = vmatmul.mubr.bf16.vlgmr.msra.gmra.mxu0 %v1844_v9 }
  0xad   : > { %1671 = vmatprep.mubr.bf16.mxu0 %v1845_v10 }
  0xae   : > { %1712 = vmatpush3.bf16.msra.mxu1 %v1865_v30  ;;  %v1885_v30 = vld [vmem:[%s2351_s9 + $0x10] ss:$8 sps:$4 sm:$0xff]  }
  0xaf   : > { %1713 = vmatprep.subr.bf16.mxu1 %v1866_v31 }
  0xb2   : > { %1714 = vmatpush3.bf16.msra.mxu1 %v1866_v31  ;;  %v1886_v31 = vld [vmem:[%s2351_s9 + $0x30] ss:$8 sps:$4 sm:$0xff]  }
  0xb4   : > { %1672 = vmatmul.mubr.bf16.gmra.mxu0 %v1846_v11 }
  0xb5   : > { %1675 = vmatprep.mubr.bf16.mxu0 %v1847_v12  ;;  %1716 = vmatmul.mubr.bf16.vlgmr.msra.gmra.mxu1 %v1868_v33  ;;  %v1889_v33 = vld [vmem:[%s2351_s9 + $0x40] ss:$8 sps:$4 sm:$0xff]  }
  0xb6   : > { %1719 = vmatprep.mubr.bf16.mxu1 %v1869_v34  ;;  %v1890_v34 = vld [vmem:[%s2351_s9 + $0x54] ss:$8 sps:$4 sm:$0xff]  }
  0xbc   : > { %1676 = vmatmul.mubr.bf16.gmra.mxu0 %v1848_v13 }
  0xbd   : > { %1679 = vmatprep.mubr.bf16.mxu0 %v1849_v14  ;;  %1720 = vmatmul.mubr.bf16.gmra.mxu1 %v1870_v35  ;;  %v1892_v35 = vld [vmem:[%s2351_s9 + $0x50] ss:$8 sps:$4 sm:$0xff]  }
  0xbe   : > { %1723 = vmatprep.mubr.bf16.mxu1 %v1871_v36  ;;  %v1893_v36 = vld [vmem:[%s2351_s9 + $0x64] ss:$8 sps:$4 sm:$0xff]  }
  0xc4   : > { %1680 = vmatmul.mubr.bf16.gmra.mxu0 %v1850_v15 }
  0xc5   : > { %1683 = vmatprep.mubr.bf16.mxu0 %v1851_v16  ;;  %1724 = vmatmul.mubr.bf16.gmra.mxu1 %v1872_v37  ;;  %v1895_v37 = vld [vmem:[%s2351_s9 + $0x60] ss:$8 sps:$4 sm:$0xff]  }
  0xc6   : > { %1727 = vmatprep.mubr.bf16.mxu1 %v1873_v38  ;;  %v1896_v38 = vld [vmem:[%s2351_s9 + $0x74] ss:$8 sps:$4 sm:$0xff]  }
  0xcc   : > { %1684 = vmatmul.mubr.bf16.gmra.mxu0 %v1852_v17 }
  0xcd   : > { %1687 = vmatprep.mubr.bf16.mxu0 %v1853_v18  ;;  %1728 = vmatmul.mubr.bf16.gmra.mxu1 %v1874_v39  ;;  %v1898_v39 = vld [vmem:[%s2351_s9 + $0x70] ss:$8 sps:$4 sm:$0xff]  }
  0xce   : > { %1101 = vmatprep.mubr.bf16.mxu1 %v1880_v41 }
  0xd4   : > { %1688 = vmatmul.mubr.bf16.gmra.mxu0 %v1854_v19 }
  0xd5   : > { %1691 = vmatprep.mubr.bf16.mxu0 %v1855_v20 }
  0xdc   : > { %1692 = vmatmul.mubr.bf16.gmra.mxu0 %v1856_v21 }
  0xdd   : > { %1695 = vmatprep.mubr.bf16.mxu0 %v1857_v22 }
  0xe4   : > { %1696 = vmatmul.mubr.bf16.gmra.mxu0 %v1858_v23 }
  0xe5   : > { %1085 = vmatprep.mubr.bf16.mxu0 %v1877_v40 }
 0x16c   : > { %v1669_v42 = vpop.f32.mrf.mxu0 }
 0x16e   : > { %v582_v43 = vpop.f32.mrf.mxu0 }
 0x170   : > { %v1670_v44 = vpop.f32.mrf.mxu0 }
 0x171   : > { %v2388_v45 = vpack.c.bf16 %v1670_v44, %v1669_v42 }
 0x172   : > { %v585_v46 = vpop.f32.mrf.mxu0 }
 0x173   : > { %v2390_v47 = vpack.c.bf16 %v585_v46, %v582_v43 }
 0x174   : > { %v1673_v48 = vpop.f32.mrf.mxu0 }
 0x175   : > { %v1717_v40 = vpop.f32.mrf.mxu1 }
 0x176   : > { %v598_v49 = vpop.f32.mrf.mxu0 }
 0x177   : > { %v894_v41 = vpop.f32.mrf.mxu1 }
 0x178   : > { %v1674_v50 = vpop.f32.mrf.mxu0 }
 0x179   : > { %v712_v51 = vpack.c.bf16 %v1674_v50, %v1673_v48  ;;  %v1718_v42 = vpop.f32.mrf.mxu1 }
 0x17a   : > { %v601_v52 = vpop.f32.mrf.mxu0 }
 0x17b   : > { %v711_v53 = vpack.c.bf16 %v601_v52, %v598_v49  ;;  %v897_v43 = vpop.f32.mrf.mxu1 }
 0x17c   : > { %v1677_v54 = vpop.f32.mrf.mxu0 }
 0x17d   : > { %v1721_v44 = vpop.f32.mrf.mxu1 }
 0x17e   : > { %v614_v55 = vpop.f32.mrf.mxu0 }
 0x180   : > { %v1678_v56 = vpop.f32.mrf.mxu0 }
 0x181   : > { %v714_v19 = vpack.c.bf16 %v1678_v56, %v1677_v54 }
 0x182   : > { %v617_v57 = vpop.f32.mrf.mxu0 }
 0x183   : > { %v713_v21 = vpack.c.bf16 %v617_v57, %v614_v55 }
 0x184   : > { %v1681_v58 = vpop.f32.mrf.mxu0 }
 0x186   : > { %v630_v59 = vpop.f32.mrf.mxu0 }
 0x188   : > { %v1682_v60 = vpop.f32.mrf.mxu0 }
 0x189   : > { %v716_v14 = vpack.c.bf16 %v1682_v60, %v1681_v58  ;;  %v2429_v58 = vld [vmem:[%s2522_s5] ss:$0 sm:$0xff] }
 0x18a   : > { %v633_v61 = vpop.f32.mrf.mxu0 }
 0x18b   : > { %v715_v17 = vpack.c.bf16 %v633_v61, %v630_v59 }
 0x18c   : > { %v1685_v62 = vpop.f32.mrf.mxu0 }
 0x18e   : > { %v646_v63 = vpop.f32.mrf.mxu0 }
 0x190   : > { %v1686_v0 = vpop.f32.mrf.mxu0 }
 0x191   : > { %v718_v24 = vpack.c.bf16 %v1686_v0, %v1685_v62 }
 0x192   : > { %v649_v1 = vpop.f32.mrf.mxu0 }
 0x193   : > { %v717_v25 = vpack.c.bf16 %v649_v1, %v646_v63  ;;  %v895_v63 = vadd.f32 %v2429_v58, %v894_v41 }
 0x194   : > { %v1689_v2 = vpop.f32.mrf.mxu0 }
 0x196   : > { %v662_v3 = vpop.f32.mrf.mxu0 }
 0x198   : > { %v1690_v4 = vpop.f32.mrf.mxu0 }
 0x199   : > { %v720_v22 = vpack.c.bf16 %v1690_v4, %v1689_v2 }
 0x19a   : > { %v665_v5 = vpop.f32.mrf.mxu0 }
 0x19b   : > { %v719_v23 = vpack.c.bf16 %v665_v5, %v662_v3 }
 0x19c   : > { %v1693_v6 = vpop.f32.mrf.mxu0 }
 0x19e   : > { %v678_v7 = vpop.f32.mrf.mxu0 }
 0x1a0   : > { %v1694_v8 = vpop.f32.mrf.mxu0 }
 0x1a1   : > { %v722_v18 = vpack.c.bf16 %v1694_v8, %v1693_v6 }
 0x1a2   : > { %v681_v9 = vpop.f32.mrf.mxu0 }
 0x1a3   : > { %v721_v20 = vpack.c.bf16 %v681_v9, %v678_v7  ;;  %v898_v7 = vadd.f32 %v2429_v58, %v897_v43 }
 0x1a4   : > { %v1697_v10 = vpop.f32.mrf.mxu0 }
 0x1a6   : > { %v694_v11 = vpop.f32.mrf.mxu0 }
 0x1a8   : > { %v1698_v12 = vpop.f32.mrf.mxu0 }
 0x1a9   : > { %v724_v13 = vpack.c.bf16 %v1698_v12, %v1697_v10 }
 0x1aa   : > { %v697_v15 = vpop.f32.mrf.mxu0 }
 0x1ab   : > { %v723_v16 = vpack.c.bf16 %v697_v15, %v694_v11  ;;  %1587 = vmatprep.subr.bf16.mxu0 %v724_v13  ;;  %1731 = vmatprep.subr.bf16.mxu1 %v724_v13 }
 0x1ac   : > { %1588 = vmatpush3.bf16.msra.mxu0 %v716_v14  ;;  %1739 = vmatpush3.bf16.msra.mxu1 %v716_v14 }
 0x1ad   : > { %1589 = vmatprep.subr.bf16.mxu0 %v723_v16  ;;  %1732 = vmatprep.subr.bf16.mxu1 %v723_v16 }
 0x1b0   : > { %1590 = vmatpush3.bf16.msra.mxu0 %v715_v17  ;;  %1740 = vmatpush3.bf16.msra.mxu1 %v715_v17 }
 0x1b1   : > { %1591 = vmatprep.subr.bf16.mxu0 %v722_v18  ;;  %1733 = vmatprep.subr.bf16.mxu1 %v722_v18 }
 0x1b4   : > { %1592 = vmatpush3.bf16.msra.mxu0 %v714_v19  ;;  %1741 = vmatpush3.bf16.msra.mxu1 %v714_v19 }
 0x1b5   : > { %1593 = vmatprep.subr.bf16.mxu0 %v721_v20  ;;  %1734 = vmatprep.subr.bf16.mxu1 %v721_v20 }
 0x1b8   : > { %1594 = vmatpush3.bf16.msra.mxu0 %v713_v21  ;;  %1742 = vmatpush3.bf16.msra.mxu1 %v713_v21 }
 0x1b9   : > { %1595 = vmatprep.subr.bf16.mxu0 %v720_v22  ;;  %1735 = vmatprep.subr.bf16.mxu1 %v720_v22 }
 0x1bc   : > { %1596 = vmatpush3.bf16.msra.mxu0 %v712_v51  ;;  %1743 = vmatpush3.bf16.msra.mxu1 %v712_v51 }
 0x1bd   : > { %1597 = vmatprep.subr.bf16.mxu0 %v719_v23  ;;  %1736 = vmatprep.subr.bf16.mxu1 %v719_v23  ;;  %v903_v23 = vadd.f32 %v1717_v40, %v2429_v58 }
 0x1c0   : > { %1598 = vmatpush3.bf16.msra.mxu0 %v711_v53  ;;  %1744 = vmatpush3.bf16.msra.mxu1 %v711_v53 }
 0x1c1   : > { %1599 = vmatprep.subr.bf16.mxu0 %v718_v24  ;;  %1737 = vmatprep.subr.bf16.mxu1 %v718_v24 }
 0x1c4   : > { %1600 = vmatpush3.bf16.msra.mxu0 %v2388_v45  ;;  %1745 = vmatpush3.bf16.msra.mxu1 %v2388_v45  ;;  %v910_v45 = vpop.f32.mrf.mxu1 }
 0x1c5   : > { %1601 = vmatprep.subr.bf16.mxu0 %v717_v25  ;;  %1738 = vmatprep.subr.bf16.mxu1 %v717_v25  ;;  %v911_v0 = vadd.f32 %v2429_v58, %v910_v45 }
 0x1c6   : > { %v1722_v46 = vpop.f32.mrf.mxu1 }
 0x1c8   : > { %1602 = vmatpush3.bf16.msra.mxu0 %v2390_v47  ;;  %1746 = vmatpush3.bf16.msra.mxu1 %v2390_v47  ;;  %v913_v47 = vpop.f32.mrf.mxu1 }
 0x1c9   : > { %v914_v8 = vadd.f32 %v2429_v58, %v913_v47 }
 0x1ca   : > { %v2410_v48 = vpop.f32.mrf.mxu1 }
 0x1cb   : > { %1086 = vmatmul.mubr.bf16.vlgmr.msra.gmra.mxu0 %v1875_v26  ;;  %1102 = vmatmul.mubr.bf16.vlgmr.msra.gmra.mxu1 %v1878_v27  ;;  %v919_v26 = vadd.f32 %v1721_v44, %v2429_v58 }
 0x1cc   : > { %1093 = vmatprep.mubr.bf16.mxu0 %v1881_v28  ;;  %1109 = vmatprep.mubr.bf16.mxu1 %v1883_v29  ;;  %v2412_v49 = vpop.f32.mrf.mxu1  ;;  %v906_v29 = vadd.f32 %v1718_v42, %v2429_v58 }
 0x1cd   : > { %v927_v47 = vadd.f32 %v2429_v58, %v2412_v49  ;;  %v935_v49 = vadd.f32 %v2410_v48, %v2429_v58 }
 0x1ce   : > { %v2414_v50 = vpop.f32.mrf.mxu1 }
 0x1d0   : > { %v2416_v51 = vpop.f32.mrf.mxu1 }
 0x1d2   : > { %v2418_v52 = vpop.f32.mrf.mxu1 }
 0x1d3   : > { %1094 = vmatmul.mubr.bf16.gmra.mxu0 %v1885_v30  ;;  %1110 = vmatmul.mubr.bf16.gmra.mxu1 %v1886_v31 }
 0x1d4   : > { %1117 = vmatprep.mubr.bf16.mxu1 %v1887_v32  ;;  %v2420_v53 = vpop.f32.mrf.mxu1 }
 0x1d6   : > { %v2422_v54 = vpop.f32.mrf.mxu1 }
 0x1d8   : > { %v2424_v55 = vpop.f32.mrf.mxu1 }
 0x1db   : > { %1118 = vmatmul.mubr.bf16.gmra.mxu1 %v1889_v33  ;;  %v922_v33 = vadd.f32 %v1722_v46, %v2429_v58 }
 0x1dc   : > { %1125 = vmatprep.mubr.bf16.mxu1 %v1890_v34 }
 0x1e3   : > { %1126 = vmatmul.mubr.bf16.gmra.mxu1 %v1892_v35 }
 0x1e4   : > { %1133 = vmatprep.mubr.bf16.mxu1 %v1893_v36 }
 0x1eb   : > { %1134 = vmatmul.mubr.bf16.gmra.mxu1 %v1895_v37 }
 0x1ec   : > { %1141 = vmatprep.mubr.bf16.mxu1 %v1896_v38 }
 0x1f3   : > { %1142 = vmatmul.mubr.bf16.gmra.mxu1 %v1898_v39 }
 0x28b   : > { %v1603_v56 = vpop.f32.mrf.mxu0  ;;  %v1615_v57 = vpop.f32.mrf.mxu1 }
 0x28d   : > { %v1604_v59 = vpop.f32.mrf.mxu0  ;;  %v1616_v60 = vpop.f32.mrf.mxu1 }
 0x28e   : > { %v1605_v61 = vadd.f32 %v1604_v59, %v1603_v56  ;;  %v1617_v62 = vadd.f32 %v1616_v60, %v1615_v57  ;;  %v930_v60 = vadd.f32 %v2429_v58, %v2416_v51  ;;  %v938_v51 = vadd.f32 %v2414_v50, %v2429_v58 }
 0x28f   : > { %v1606_v1 = vpop.f32.mrf.mxu0  ;;  %v1618_v2 = vpop.f32.mrf.mxu1 }
 0x290   : > { %v1088_v3 = vadd.f32 %v1605_v61, %v895_v63  ;;  %v1104_v4 = vadd.f32 %v1617_v62, %v911_v0 }
 0x291   : > { %v1607_v5 = vpop.f32.mrf.mxu0  ;;  %v1619_v6 = vpop.f32.mrf.mxu1 }
 0x292   : > { %v1608_v9 = vadd.f32 %v1607_v5, %v1606_v1  ;;  %v1620_v10 = vadd.f32 %v1619_v6, %v1618_v2  ;;  %v1150_v15 = vmax.f32 %v1088_v3, 0.0  ;;  %v1154_v16 = vmax.f32 %v1104_v4, 0.0 }
 0x293   : > { %v1609_v11 = vpop.f32.mrf.mxu0  ;;  %v1621_v12 = vpop.f32.mrf.mxu1 }
 0x294   : > { %v1091_v13 = vadd.f32 %v1608_v9, %v898_v7  ;;  %v1107_v14 = vadd.f32 %v1620_v10, %v914_v8 }
 0x295   : > { %v1610_v17 = vpop.f32.mrf.mxu0  ;;  %v1622_v18 = vpop.f32.mrf.mxu1 }
 0x296   : > { %v1151_v19 = vmax.f32 %v1091_v13, 0.0  ;;  %v1155_v20 = vmax.f32 %v1107_v14, 0.0  ;;  %v1611_v21 = vadd.f32 %v1610_v17, %v1609_v11  ;;  %v1623_v22 = vadd.f32 %v1622_v18, %v1621_v12 }
 0x297   : > { %v1612_v24 = vpop.f32.mrf.mxu0  ;;  %v1624_v25 = vpop.f32.mrf.mxu1  ;;  %v943_v17 = vadd.f32 %v2429_v58, %v2420_v53  ;;  %v951_v53 = vadd.f32 %v2418_v52, %v2429_v58 }
 0x298   : > { %v1503_v27 = vpack.c.bf16 %v1151_v19, %v1150_v15  ;;  %v1513_v28 = vpack.c.bf16 %v1155_v20, %v1154_v16  ;;  %v1096_v30 = vadd.f32 %v1611_v21, %v903_v23  ;;  %v1112_v34 = vadd.f32 %v1623_v22, %v919_v26 }
 0x299   : > { %v1613_v31 = vpop.f32.mrf.mxu0  ;;  %v1625_v32 = vpop.f32.mrf.mxu1  ;;  %v946_v19 = vadd.f32 %v2429_v58, %v2424_v55  ;;  %v954_v55 = vadd.f32 %v2422_v54, %v2429_v58 }
 0x29a   : > { %1504 = vst [vmem:[%s2441_s10] sm:$0xff] %v1503_v27   ;;  %1541 = vst [vmem:[%s2441_s10 + $0x10] sm:$0xff] %v1513_v28   ;;  %v1614_v35 = vadd.f32 %v1613_v31, %v1612_v24  ;;  %v1626_v36 = vadd.f32 %v1625_v32, %v1624_v25  ;;  %v1152_v40 = vmax.f32 %v1096_v30, 0.0  ;;  %v1156_v42 = vmax.f32 %v1112_v34, 0.0 }
 0x29b   : > { %v1627_v37 = vpop.f32.mrf.mxu1 }
 0x29c   : > { %v1099_v38 = vadd.f32 %v1614_v35, %v906_v29  ;;  %v1115_v39 = vadd.f32 %v1626_v36, %v922_v33 }
 0x29d   : > { %v1628_v41 = vpop.f32.mrf.mxu1 }
 0x29e   : > { %v1153_v43 = vmax.f32 %v1099_v38, 0.0  ;;  %v1157_v44 = vmax.f32 %v1115_v39, 0.0  ;;  %v1629_v45 = vadd.f32 %v1628_v41, %v1627_v37 }
 0x29f   : > { %v1630_v46 = vpop.f32.mrf.mxu1 }
 0x2a0   : > { %v1508_v56 = vpack.c.bf16 %v1153_v43, %v1152_v40  ;;  %v1518_v57 = vpack.c.bf16 %v1157_v44, %v1156_v42  ;;  %v1120_v61 = vadd.f32 %v1629_v45, %v927_v47 }
 0x2a1   : > { %v1631_v59 = vpop.f32.mrf.mxu1 }
 0x2a2   : > { %1540 = vst [vmem:[%s2441_s10 + $0x8] sm:$0xff] %v1508_v56   ;;  %1542 = vst [vmem:[%s2441_s10 + $0x18] sm:$0xff] %v1518_v57   ;;  %v1632_v62 = vadd.f32 %v1631_v59, %v1630_v46  ;;  %v1158_v2 = vmax.f32 %v1120_v61, 0.0 }
 0x2a3   : > { %v1633_v63 = vpop.f32.mrf.mxu1 }
 0x2a4   : > { %v1123_v0 = vadd.f32 %v1632_v62, %v930_v60 }
 0x2a5   : > { %v1634_v1 = vpop.f32.mrf.mxu1 }
 0x2a6   : > { %v1159_v3 = vmax.f32 %v1123_v0, 0.0  ;;  %v1635_v4 = vadd.f32 %v1634_v1, %v1633_v63 }
 0x2a7   : > { %v1636_v5 = vpop.f32.mrf.mxu1 }
 0x2a8   : > { %v1523_v6 = vpack.c.bf16 %v1159_v3, %v1158_v2  ;;  %v1128_v8 = vadd.f32 %v1635_v4, %v935_v49 }
 0x2a9   : > { %v1637_v7 = vpop.f32.mrf.mxu1 }
 0x2aa   : > { %1543 = vst [vmem:[%s2441_s10 + $0x20] sm:$0xff] %v1523_v6   ;;  %v1638_v9 = vadd.f32 %v1637_v7, %v1636_v5  ;;  %v1160_v13 = vmax.f32 %v1128_v8, 0.0 }
 0x2ab   : > { %v1639_v10 = vpop.f32.mrf.mxu1 }
 0x2ac   : > { %v1131_v11 = vadd.f32 %v1638_v9, %v938_v51 }
 0x2ad   : > { %v1640_v12 = vpop.f32.mrf.mxu1 }
 0x2ae   : > { %v1161_v14 = vmax.f32 %v1131_v11, 0.0  ;;  %v1641_v15 = vadd.f32 %v1640_v12, %v1639_v10 }
 0x2af   : > { %v1642_v16 = vpop.f32.mrf.mxu1 }
 0x2b0   : > { %v1528_v48 = vpack.c.bf16 %v1161_v14, %v1160_v13  ;;  %v1136_v50 = vadd.f32 %v1641_v15, %v943_v17 }
 0x2b1   : > { %v1643_v18 = vpop.f32.mrf.mxu1 }
 0x2b2   : > { %1544 = vst [vmem:[%s2441_s10 + $0x28] sm:$0xff] %v1528_v48   ;;  %v1644_v20 = vadd.f32 %v1643_v18, %v1642_v16  ;;  %v1162_v24 = vmax.f32 %v1136_v50, 0.0 }
 0x2b3   : > { %v1645_v21 = vpop.f32.mrf.mxu1 }
 0x2b4   : > { %v1139_v22 = vadd.f32 %v1644_v20, %v946_v19 }
 0x2b5   : > { %v1646_v23 = vpop.f32.mrf.mxu1 }
 0x2b6   : > { %v1163_v25 = vmax.f32 %v1139_v22, 0.0  ;;  %v1647_v26 = vadd.f32 %v1646_v23, %v1645_v21 }
 0x2b7   : > { %v1648_v27 = vpop.f32.mrf.mxu1 }
 0x2b8   : > { %v1533_v28 = vpack.c.bf16 %v1163_v25, %v1162_v24  ;;  %v1144_v30 = vadd.f32 %v1647_v26, %v951_v53 }
 0x2b9   : > { %v1649_v29 = vpop.f32.mrf.mxu1 }
 0x2ba   : > { %1545 = vst [vmem:[%s2441_s10 + $0x30] sm:$0xff] %v1533_v28   ;;  %v1650_v31 = vadd.f32 %v1649_v29, %v1648_v27  ;;  %v1164_v33 = vmax.f32 %v1144_v30, 0.0 }
 0x2bc   : > { %v1147_v32 = vadd.f32 %v1650_v31, %v954_v55 }
 0x2be   : > { %v1165_v34 = vmax.f32 %v1147_v32, 0.0 }
 0x2c0   : > { %v1538_v52 = vpack.c.bf16 %v1165_v34, %v1164_v33 }
 0x2c2   : > { %1546 = vst [vmem:[%s2441_s10 + $0x38] sm:$0xff] %v1538_v52  }
 0x2c3   : > { %2046 = shalt.err (!%p2043_p5)
}
 0x2c4   : > { %s2047_s8 = scalar_lea.hbm %s2471_s14, 1024  ;;  %s2051_s29 = scalar_lea.hbm %s2523_s6, 2048 }
 0x2c5   : > { %p2048_p2 = scmp.ne.s32.totalorder %s2471_s14, %s2047_s8  ;;  %p2052_p3 = scmp.lt.s32.totalorder %s2471_s14, %s2523_s6 }
 0x2c6   : > { %p2053_p1 = scmp.lt.s32.totalorder %s2051_s29, %s2047_s8 }
 0x2c7   : > { %p2049_p9 = pnand %p2048_p2, %p2558_p6 }
 0x2c8   : > { %p2054_p11 = por %p2053_p1, %p2052_p3 }
 0x2c9   : > { %p2050_p13 = pneg %p2049_p9 }
 0x2cb   : > { %p2055_p4 = pnand %p2054_p11, %p2050_p13 }
 0x2cd   : > { %2058 = shalt.err (!%p2055_p4)
}
 0x2ce   : > { %s2125_s15 = smov 64   ;;  %s2126_s10 = smov 4  }
 0x2cf   : > { %1763 = dma.vmem_to_hbm [thread:$0]  (%p2558_p6), %s2473_s11, 1024, %s2471_s14, %s1247_s20, %s2125_s15, %s2125_s15, %s2126_s10  }
 0x2d0 PF: > { %s1275_s7 = sand.u32 1, %s2101_s21   ;;  %p2559_p8 = scmp.ne.s32.totalorder %s2538_s28, 0 }
 0x2d1   : > { %p2560_p12 = scmp.ge.s32.totalorder %s2113_s24, 2  ;;  %s1276_s19 = scalar_lea.sflag [#allocation4], %s1275_s7 }
 0x2d3   : > { %p1783_p7 = pnand %p2560_p12, %p2559_p8 }
 0x2d5   : > { %p1784_p0 = pneg %p1783_p7 }
 0x2d7   : > { %2096 = dma.done.wait (%p1784_p0), %s1276_s19, 1024  }
 0x2d8   : > { %2098 = vsyncadd (%p1784_p0), %s1276_s19, 4294966272  ;;  %s2561_s24 = sld [smem:[#allocation18_spill]]  ;;  %s2562_s21 = smov %s2105_s22 }
 0x2d9   : > { %s2563_s22 = smov %s2109_s23  ;;  %s2564_s23 = smov %s2239_s17 }
 0x2de   : > { %p21_p10 = scmp.ge.s32.totalorder %s2561_s24, 4  }
 0x2e0   :  { %23 = sbr.rel (!%p21_p10) target bundleno = 10 (0xa), region = 112 }
 0x2e5   :  { %1281 = vsyncpa [#allocation3], 1 }
 0x2e6   :  { %1283 = vsyncpa [#allocation3 + $0x1], 1 }
 0x2e7   :  { %1284 = vsyncpa [#allocation6], 1 }
 0x2e8   :  { %1285 = vsyncpa [#allocation10], 1 }
 0x2e9   :  { %1286 = vsyncpa [#allocation4], 1 }
 0x2ea   :  { %1288 = vsyncpa [#allocation4 + $0x1], 1 }

</bundles_post_ra>
